<compile_context>
chip_gen: v5e
topology: v5e:2x2
jax: 0.10.0
libtpu: 0.0.40
codegen_flags: <defaults>
</compile_context>

<pallas_src>
import jax
import jax.numpy as jnp
from jax.experimental import pallas as pl
from jax.experimental.pallas import tpu as pltpu

_HIDDEN = 128  # fixed by the PyTorch module (nn.Linear(..., 128))


def _round_up(n, m):
    return ((n + m - 1) // m) * m


def _autoencoder_kernel(x_ref,
                        w1_ref, b1_ref,     # encoder linear 1: (E_pad, 128), (1, 128)
                        w23_ref, b23_ref,   # fused middle:     (128, 128),   (1, 128)
                        w4_ref, b4_ref,     # decoder linear 2: (128, I_pad), (1, I_pad)
                        out_ref):
    x = x_ref[...]                                               # bf16 (TB, E_pad)

    # encoder Linear(E, 128) + ReLU
    h1 = jnp.dot(x, w1_ref[...], preferred_element_type=jnp.float32) + b1_ref[...]
    h1 = jnp.maximum(h1, 0.0).astype(jnp.bfloat16)

    # fused encoder-Linear(128, E) -> decoder-Linear(E, 128), then ReLU
    h2 = jnp.dot(h1, w23_ref[...], preferred_element_type=jnp.float32) + b23_ref[...]
    h2 = jnp.maximum(h2, 0.0).astype(jnp.bfloat16)

    # decoder Linear(128, I)
    y = jnp.dot(h2, w4_ref[...], preferred_element_type=jnp.float32) + b4_ref[...]

    out_ref[...] = y.astype(out_ref.dtype)                       # lane-dense store


def autoencoder_forward(x, params, out_dtype=jnp.float32):
    """x: (B, encoding_dim) f32.  Returns (B, input_dim) in out_dtype."""
    B, E = x.shape
    assert E == params["encoding_dim"]
    E_pad = params["w1"].shape[0]
    I_pad = params["w4"].shape[1]
    input_dim = params["input_dim"]

    # Batch tiling: 16-aligned (bf16 sublane packing), capped at 1024, and
    # >= 2 grid steps when B > 16 so both v7x TensorCores get work.
    if B <= 16:
        TB = 16
    else:
        TB = min(1024, _round_up(-(-B // 2), 16))
    B_pad = _round_up(B, TB)
    n_blocks = B_pad // TB

    # Cast once to bf16; pad (single jnp.pad) only if shapes require it.
    x_b = x.astype(jnp.bfloat16)
    if (B_pad, E_pad) != (B, E):
        x_b = jnp.pad(x_b, ((0, B_pad - B), (0, E_pad - E)))

    # Weights / biases: full-array blocks, constant index_map -> VMEM-resident.
    def resident(a):
        return pl.BlockSpec(a.shape, lambda i: (0,) * a.ndim)

    w_args = (params["w1"], params["b1"],
              params["w23"], params["b23"],
              params["w4"], params["b4"])

    # Explicit scoped-VMEM limit only when the footprint would exceed the
    # conservative defaults (v5e: 16 MiB, v6e/v7x: 32 MiB).
    out_itemsize = jnp.dtype(out_dtype).itemsize
    vmem_bytes = (2 * TB * E_pad * 2                       # x tile, double-buffered (bf16)
                  + 2 * TB * I_pad * out_itemsize          # out tile, double-buffered
                  + 2 * sum(int(a.size) * a.dtype.itemsize for a in w_args))
    cp_kwargs = dict(dimension_semantics=("parallel",))
    if vmem_bytes > (12 << 20):
        cp_kwargs["vmem_limit_bytes"] = min(int(vmem_bytes * 1.25) + (4 << 20), 100 << 20)

    out_p = pl.pallas_call(
        _autoencoder_kernel,
        out_shape=jax.ShapeDtypeStruct((B_pad, I_pad), out_dtype),
        grid=(n_blocks,),
        in_specs=[pl.BlockSpec((TB, E_pad), lambda i: (i, 0))]
                 + [resident(a) for a in w_args],
        out_specs=pl.BlockSpec((TB, I_pad), lambda i: (i, 0)),
        compiler_params=pltpu.CompilerParams(**cp_kwargs),
    )(x_b, *w_args)

    return out_p[:B, :input_dim]


def init_params(key, input_dim, encoding_dim, hidden=_HIDDEN):
    """Init mimicking nn.Linear default (uniform +/- 1/sqrt(fan_in)).

    Kernel-side weights are stored transposed as (in_features, out_features),
    zero-padded to lane-dense (128-multiple) feature dims, and cast to bf16;
    biases stay f32.  The two middle linears are algebraically fused in f32
    before the bf16 cast.  Unfused f32 copies are kept for the reference."""
    E_pad = _round_up(encoding_dim, 128)
    I_pad = _round_up(input_dim, 128)

    def linear(key, fan_in, fan_out):
        kw, kb = jax.random.split(key)
        bound = float(fan_in) ** -0.5
        w = jax.random.uniform(kw, (fan_in, fan_out), jnp.float32, -bound, bound)
        b = jax.random.uniform(kb, (1, fan_out), jnp.float32, -bound, bound)
        return w, b

    k1, k2, k3, k4 = jax.random.split(key, 4)
    w1, b1 = linear(k1, encoding_dim, hidden)   # enc Linear(E, 128)
    w2, b2 = linear(k2, hidden, encoding_dim)   # enc Linear(128, E)
    w3, b3 = linear(k3, encoding_dim, hidden)   # dec Linear(E, 128)
    w4, b4 = linear(k4, hidden, input_dim)      # dec Linear(128, I)

    # Algebraic fusion (no nonlinearity between enc-L2 and dec-L1), done in f32.
    w23 = w2 @ w3                # (128, 128)
    b23 = b2 @ w3 + b3           # (1, 128)

    # Zero-pad so padded rows/cols contribute nothing to the visible output.
    w1_p = jnp.zeros((E_pad, hidden), jnp.float32).at[:encoding_dim, :].set(w1)
    w4_p = jnp.zeros((hidden, I_pad), jnp.float32).at[:, :input_dim].set(w4)
    b4_p = jnp.zeros((1, I_pad), jnp.float32).at[:, :input_dim].set(b4)

    return dict(
        w1=w1_p.astype(jnp.bfloat16), b1=b1,
        w23=w23.astype(jnp.bfloat16), b23=b23,
        w4=w4_p.astype(jnp.bfloat16), b4=b4_p,
        ref=dict(w1=w1, b1=b1, w2=w2, b2=b2, w3=w3, b3=b3, w4=w4, b4=b4),
        encoding_dim=encoding_dim, input_dim=input_dim,
    )


def reference_forward(x, p):
    """Pure-JAX f32 reference with the exact PyTorch (unfused) structure."""
    r = p["ref"]
    h1 = jnp.maximum(x @ r["w1"] + r["b1"], 0.0)
    xe = h1 @ r["w2"] + r["b2"]
    h2 = jnp.maximum(xe @ r["w3"] + r["b3"], 0.0)
    return h2 @ r["w4"] + r["b4"]


if __name__ == "__main__":
    key = jax.random.PRNGKey(0)
    k_x, k_p = jax.random.split(key)

    batch, encoding_dim, input_dim = 8, 32, 64
    x = jax.random.normal(k_x, (batch, encoding_dim), jnp.float32)
    params = init_params(k_p, input_dim=input_dim, encoding_dim=encoding_dim)

    out = jax.block_until_ready(autoencoder_forward(x, params))

    ref = reference_forward(x, params)
    assert out.shape == (batch, input_dim)
    # bf16 MXU operands + f32 accumulation vs pure-f32 PyTorch-style reference.
    assert jnp.allclose(out, ref, atol=6e-2, rtol=6e-2), "mismatch vs pure-JAX f32 reference"

    print("KERNEL_OK")
</pallas_src>

<mosaic_0001>
module attributes {stable_mosaic.version = 11 : i64} {
  func.func @_autoencoder_kernel(%arg0: i32, %arg1: memref<16x128xbf16, #tpu.memory_space<vmem>>, %arg2: memref<128x128xbf16, #tpu.memory_space<vmem>>, %arg3: memref<1x128xf32, #tpu.memory_space<vmem>>, %arg4: memref<128x128xbf16, #tpu.memory_space<vmem>>, %arg5: memref<1x128xf32, #tpu.memory_space<vmem>>, %arg6: memref<128x128xbf16, #tpu.memory_space<vmem>>, %arg7: memref<1x128xf32, #tpu.memory_space<vmem>>, %arg8: memref<16x128xf32, #tpu.memory_space<vmem>>) attributes {dimension_semantics = [#tpu.dimension_semantics<parallel>], iteration_bounds = array<i64: 1>, scalar_prefetch = 0 : i64, scratch_operands = 0 : i64, tpu.core_type = #tpu.core_type<tc>, window_params = [{transform_indices = @transform_0, window_bounds = array<i64: 16, 128>}, {pipeline_mode = #tpu.pipeline_mode<synchronous>, transform_indices = @transform_1, window_bounds = array<i64: 128, 128>}, {pipeline_mode = #tpu.pipeline_mode<synchronous>, transform_indices = @transform_2, window_bounds = array<i64: 1, 128>}, {pipeline_mode = #tpu.pipeline_mode<synchronous>, transform_indices = @transform_3, window_bounds = array<i64: 128, 128>}, {pipeline_mode = #tpu.pipeline_mode<synchronous>, transform_indices = @transform_4, window_bounds = array<i64: 1, 128>}, {pipeline_mode = #tpu.pipeline_mode<synchronous>, transform_indices = @transform_5, window_bounds = array<i64: 128, 128>}, {pipeline_mode = #tpu.pipeline_mode<synchronous>, transform_indices = @transform_6, window_bounds = array<i64: 1, 128>}, {transform_indices = @transform_7, window_bounds = array<i64: 16, 128>}]} {
    %c0 = arith.constant 0 : index
    %c0_0 = arith.constant 0 : index
    %0 = vector.load %arg1[%c0, %c0_0] : memref<16x128xbf16, #tpu.memory_space<vmem>>, vector<16x128xbf16>
    %c0_1 = arith.constant 0 : index
    %c0_2 = arith.constant 0 : index
    %1 = vector.load %arg2[%c0_1, %c0_2] : memref<128x128xbf16, #tpu.memory_space<vmem>>, vector<128x128xbf16>
    %cst = arith.constant dense<0.000000e+00> : vector<16x128xf32>
    %2 = tpu.matmul %0, %1, %cst {dimension_numbers = #tpu.dot_dimension_numbers<[1], [0], [0], [1], [0, 0, 1, 1], [], []>} : vector<16x128xbf16>, vector<128x128xbf16>, vector<16x128xf32> -> vector<16x128xf32>
    %c0_3 = arith.constant 0 : index
    %c0_4 = arith.constant 0 : index
    %3 = vector.load %arg3[%c0_3, %c0_4] : memref<1x128xf32, #tpu.memory_space<vmem>>, vector<1x128xf32>
    %4 = vector.broadcast %3 : vector<1x128xf32> to vector<16x128xf32>
    %5 = arith.addf %2, %4 : vector<16x128xf32>
    %cst_5 = arith.constant 0.000000e+00 : f32
    %6 = vector.broadcast %cst_5 : f32 to vector<16x128xf32>
    %7 = arith.maximumf %5, %6 : vector<16x128xf32>
    %8 = arith.truncf %7 : vector<16x128xf32> to vector<16x128xbf16>
    %c0_6 = arith.constant 0 : index
    %c0_7 = arith.constant 0 : index
    %9 = vector.load %arg4[%c0_6, %c0_7] : memref<128x128xbf16, #tpu.memory_space<vmem>>, vector<128x128xbf16>
    %cst_8 = arith.constant dense<0.000000e+00> : vector<16x128xf32>
    %10 = tpu.matmul %8, %9, %cst_8 {dimension_numbers = #tpu.dot_dimension_numbers<[1], [0], [0], [1], [0, 0, 1, 1], [], []>} : vector<16x128xbf16>, vector<128x128xbf16>, vector<16x128xf32> -> vector<16x128xf32>
    %c0_9 = arith.constant 0 : index
    %c0_10 = arith.constant 0 : index
    %11 = vector.load %arg5[%c0_9, %c0_10] : memref<1x128xf32, #tpu.memory_space<vmem>>, vector<1x128xf32>
    %12 = vector.broadcast %11 : vector<1x128xf32> to vector<16x128xf32>
    %13 = arith.addf %10, %12 : vector<16x128xf32>
    %cst_11 = arith.constant 0.000000e+00 : f32
    %14 = vector.broadcast %cst_11 : f32 to vector<16x128xf32>
    %15 = arith.maximumf %13, %14 : vector<16x128xf32>
    %16 = arith.truncf %15 : vector<16x128xf32> to vector<16x128xbf16>
    %c0_12 = arith.constant 0 : index
    %c0_13 = arith.constant 0 : index
    %17 = vector.load %arg6[%c0_12, %c0_13] : memref<128x128xbf16, #tpu.memory_space<vmem>>, vector<128x128xbf16>
    %cst_14 = arith.constant dense<0.000000e+00> : vector<16x128xf32>
    %18 = tpu.matmul %16, %17, %cst_14 {dimension_numbers = #tpu.dot_dimension_numbers<[1], [0], [0], [1], [0, 0, 1, 1], [], []>} : vector<16x128xbf16>, vector<128x128xbf16>, vector<16x128xf32> -> vector<16x128xf32>
    %c0_15 = arith.constant 0 : index
    %c0_16 = arith.constant 0 : index
    %19 = vector.load %arg7[%c0_15, %c0_16] : memref<1x128xf32, #tpu.memory_space<vmem>>, vector<1x128xf32>
    %20 = vector.broadcast %19 : vector<1x128xf32> to vector<16x128xf32>
    %21 = arith.addf %18, %20 : vector<16x128xf32>
    %c0_17 = arith.constant 0 : index
    %c0_18 = arith.constant 0 : index
    %22 = vector.load %arg8[%c0_17, %c0_18] : memref<16x128xf32, #tpu.memory_space<vmem>>, vector<16x128xf32>
    tpu.vector_store %arg8[%c0_17, %c0_18], %21 {strides = array<i32>} : memref<16x128xf32, #tpu.memory_space<vmem>>, vector<16x128xf32>,
    return
  }
  func.func @transform_0(%arg0: i32) -> (i32, i32) {
    %c0_i32 = arith.constant 0 : i32
    %c0_i32_0 = arith.constant 0 : i32
    return %arg0, %c0_i32 : i32, i32
  }
  func.func @transform_1(%arg0: i32) -> (i32, i32) {
    %c0_i32 = arith.constant 0 : i32
    %c0_i32_0 = arith.constant 0 : i32
    %c0_i32_1 = arith.constant 0 : i32
    return %c0_i32, %c0_i32_0 : i32, i32
  }
  func.func @transform_2(%arg0: i32) -> (i32, i32) {
    %c0_i32 = arith.constant 0 : i32
    %c0_i32_0 = arith.constant 0 : i32
    %c0_i32_1 = arith.constant 0 : i32
    return %c0_i32, %c0_i32_0 : i32, i32
  }
  func.func @transform_3(%arg0: i32) -> (i32, i32) {
    %c0_i32 = arith.constant 0 : i32
    %c0_i32_0 = arith.constant 0 : i32
    %c0_i32_1 = arith.constant 0 : i32
    return %c0_i32, %c0_i32_0 : i32, i32
  }
  func.func @transform_4(%arg0: i32) -> (i32, i32) {
    %c0_i32 = arith.constant 0 : i32
    %c0_i32_0 = arith.constant 0 : i32
    %c0_i32_1 = arith.constant 0 : i32
    return %c0_i32, %c0_i32_0 : i32, i32
  }
  func.func @transform_5(%arg0: i32) -> (i32, i32) {
    %c0_i32 = arith.constant 0 : i32
    %c0_i32_0 = arith.constant 0 : i32
    %c0_i32_1 = arith.constant 0 : i32
    return %c0_i32, %c0_i32_0 : i32, i32
  }
  func.func @transform_6(%arg0: i32) -> (i32, i32) {
    %c0_i32 = arith.constant 0 : i32
    %c0_i32_0 = arith.constant 0 : i32
    %c0_i32_1 = arith.constant 0 : i32
    return %c0_i32, %c0_i32_0 : i32, i32
  }
  func.func @transform_7(%arg0: i32) -> (i32, i32) {
    %c0_i32 = arith.constant 0 : i32
    %c0_i32_0 = arith.constant 0 : i32
    return %arg0, %c0_i32 : i32, i32
  }
}

</mosaic_0001>

<bundles_post_ra>
// kernel: tpu_custom_call.1
= control target key start
LH: loop header
LB: loop body
LE: loop exit
PB: predicated region body
PF: predicated region fallthrough
CT: control target
= control target key end

     0   :  { %12 = vsyncpa [#allocation3], 0  ;;  %s711_s0 = inlined_call_operand.hbm [shape: bf16[16,128], index: 0, kind: input, shape index: {}]   ;;  %s712_s1 = inlined_call_operand.hbm [shape: bf16[128,128], index: 1, kind: input, shape index: {}]   ;;  %s713_s2 = inlined_call_operand.vmem [shape: f32[1,128], index: 2, kind: input, shape index: {}]   ;;  %s714_s3 = inlined_call_operand.hbm [shape: bf16[128,128], index: 3, kind: input, shape index: {}]   ;;  %s715_s4 = inlined_call_operand.vmem [shape: f32[1,128], index: 4, kind: input, shape index: {}]   ;;  %s716_s5 = inlined_call_operand.hbm [shape: bf16[128,128], index: 5, kind: input, shape index: {}]   ;;  %s717_s6 = inlined_call_operand.vmem [shape: f32[1,128], index: 6, kind: input, shape index: {}]   ;;  %s718_s7 = inlined_call_operand.hbm [shape: f32[16,128], index: 7, kind: output, shape index: {}]  }
   0x1   :  { %13 = vsyncpa [#allocation6], 0 }
   0x2   :  { %14 = vsyncpa [#allocation9], 0 }
   0x3   :  { %15 = vsyncpa [#allocation4], 0  ;;  %s33_s26 = sshll.u32 %s712_s1, 4  ;;  %s638_s27 = smov [#allocation5]   ;;  %s34_s26 = int_to_ptr.hbm [resolvable:$true] %s33_s26 }
   0x4   :  { %s35_s28 = sshll.u32 %s638_s27, 4  ;;  %s20_s8 = sshll.u32 %s711_s0, 4  ;;  %s36_s28 = int_to_ptr.vmem [resolvable:$true] %s35_s28  ;;  %s21_s8 = int_to_ptr.hbm [resolvable:$true] %s20_s8 }
   0x5   :  { %s639_s9 = smov 64   ;;  %s640_s10 = smov 4  }
   0x6   :  { %41 = dma.hbm_to_vmem [thread:$0]  %s34_s26, 1024, %s36_s28, [#allocation6], %s639_s9, %s639_s9, %s640_s10  }
   0x7   :  { %s641_s11 = smov [#allocation2]   ;;  %s48_s15 = sshll.u32 %s714_s3, 4  ;;  %s49_s15 = int_to_ptr.hbm [resolvable:$true] %s48_s15 }
   0x8   :  { %s22_s12 = sshll.u32 %s641_s11, 4  ;;  %s63_s17 = sshll.u32 %s716_s5, 4  ;;  %s23_s12 = int_to_ptr.vmem [resolvable:$true] %s22_s12  ;;  %s64_s17 = int_to_ptr.hbm [resolvable:$true] %s63_s17 }
   0x9   :  { %28 = dma.hbm_to_vmem [thread:$0]  %s21_s8, 128, %s23_s12, [#allocation3], %s639_s9, %s639_s9, %s640_s10  }
   0xa   :  { %s642_s18 = smov [#allocation7]   ;;  %s643_s0 = smov [#allocation8]  }
   0xb   :  { %s50_s19 = sshll.u32 %s642_s18, 4  ;;  %s65_s20 = sshll.u32 %s643_s0, 4  ;;  %s51_s19 = int_to_ptr.vmem [resolvable:$true] %s50_s19  ;;  %s66_s20 = int_to_ptr.vmem [resolvable:$true] %s65_s20 }
   0xc   :  { %56 = dma.hbm_to_vmem [thread:$0]  %s49_s15, 1024, %s51_s19, [#allocation6], %s639_s9, %s639_s9, %s640_s10  }
   0xd   :  { %71 = dma.hbm_to_vmem [thread:$0]  %s64_s17, 1024, %s66_s20, [#allocation9], %s639_s9, %s639_s9, %s640_s10  }
   0xe   :  { %630 = dma.done.wait [#allocation3], 128  }
   0xf   :  { %631 = vsyncadd [#allocation3], 4294967168 }
  0x10   :  { %632 = dma.done.wait [#allocation6], 2048  }
  0x11   :  { %633 = vsyncadd [#allocation6], 4294965248 }
  0x12   :  { %634 = dma.done.wait [#allocation9], 1024  }
  0x13   :  { %635 = vsyncadd [#allocation9], 4294966272  ;;  %v481_v0 = vld [vmem:[#allocation5 + $0x38] sm:$0xff]  ;;  %v480_v1 = vld [vmem:[#allocation5 + $0x30] sm:$0xff]  ;;  %s644_s24 = smov [#allocation10]   ;;  %s645_s28 = smov 128  }
  0x14   :  { %166 = vmatpush.bf16.msra.mxu0 %v481_v0  ;;  %v489_v2 = vld [vmem:[#allocation7 + $0x38] sm:$0xff]  ;;  %v488_v3 = vld [vmem:[#allocation7 + $0x30] sm:$0xff]  ;;  %v479_v4 = vld [vmem:[#allocation5 + $0x28] sm:$0xff]  ;;  %s356_s25 = sshll.u32 %s644_s24, 4  ;;  %s646_s29 = smov 8   ;;  %s357_s25 = int_to_ptr.vmem [resolvable:$true] %s356_s25 }
  0x15   :  { %251 = vmatpush.bf16.msra.mxu1 %v489_v2  ;;  %v487_v5 = vld [vmem:[#allocation7 + $0x28] sm:$0xff]  ;;  %v478_v6 = vld [vmem:[#allocation5 + $0x20] sm:$0xff]  ;;  %v477_v8 = vld [vmem:[#allocation5 + $0x18] sm:$0xff] }
  0x16   :  { %v486_v7 = vld [vmem:[#allocation7 + $0x20] sm:$0xff]  ;;  %v476_v9 = vld [vmem:[#allocation5 + $0x10] sm:$0xff]  ;;  %v475_v10 = vld [vmem:[#allocation5 + $0x8] sm:$0xff] }
  0x17   :  { %v474_v11 = vld [vmem:[#allocation5] sm:$0xff]  ;;  %v473_v12 = vld [vmem:[#allocation2] sm:$0xff]  ;;  %v484_v14 = vld [vmem:[#allocation7 + $0x10] sm:$0xff] }
  0x18   :  { %167 = vmatpush.bf16.msra.mxu0 %v480_v1  ;;  %v485_v13 = vld [vmem:[#allocation7 + $0x18] sm:$0xff]  ;;  %v483_v15 = vld [vmem:[#allocation7 + $0x8] sm:$0xff]  ;;  %v482_v16 = vld [vmem:[#allocation7] sm:$0xff] }
  0x19   :  { %252 = vmatpush.bf16.msra.mxu1 %v488_v3  ;;  %v497_v17 = vld [vmem:[#allocation8 + $0x38] sm:$0xff]  ;;  %v496_v18 = vld [vmem:[#allocation8 + $0x30] sm:$0xff]  ;;  %v495_v19 = vld [vmem:[#allocation8 + $0x28] sm:$0xff] }
  0x1a   :  { %336 = vmatpush.bf16.msra.mxu2 %v497_v17  ;;  %v494_v20 = vld [vmem:[#allocation8 + $0x20] sm:$0xff]  ;;  %v507_v22 = vld [vmem:[%s713_s2] ss:$0 sm:$0xff]  ;;  %v492_v30 = vld [vmem:[#allocation8 + $0x10] sm:$0xff] }
  0x1b   :  { %v493_v29 = vld [vmem:[#allocation8 + $0x18] sm:$0xff]  ;;  %v491_v31 = vld [vmem:[#allocation8 + $0x8] sm:$0xff]  ;;  %v490_v32 = vld [vmem:[#allocation8] sm:$0xff] }
  0x1c   :  { %168 = vmatpush.bf16.msra.mxu0 %v479_v4  ;;  %v508_v34 = vld [vmem:[%s715_s4] ss:$0 sm:$0xff]  ;;  %s358_s4 = sshll.u32 %s718_s7, 4  ;;  %s359_s4 = int_to_ptr.hbm [resolvable:$true] %s358_s4 }
  0x1d   :  { %253 = vmatpush.bf16.msra.mxu1 %v487_v5  ;;  %v509_v41 = vld [vmem:[%s717_s6] ss:$0 sm:$0xff] }
  0x1e   :  { %337 = vmatpush.bf16.msra.mxu2 %v496_v18 }
  0x20   :  { %169 = vmatpush.bf16.msra.mxu0 %v478_v6 }
  0x21   :  { %254 = vmatpush.bf16.msra.mxu1 %v486_v7 }
  0x22   :  { %338 = vmatpush.bf16.msra.mxu2 %v495_v19 }
  0x24   :  { %170 = vmatpush.bf16.msra.mxu0 %v477_v8 }
  0x25   :  { %255 = vmatpush.bf16.msra.mxu1 %v485_v13 }
  0x26   :  { %339 = vmatpush.bf16.msra.mxu2 %v494_v20 }
  0x28   :  { %171 = vmatpush.bf16.msra.mxu0 %v476_v9 }
  0x29   :  { %256 = vmatpush.bf16.msra.mxu1 %v484_v14 }
  0x2a   :  { %340 = vmatpush.bf16.msra.mxu2 %v493_v29 }
  0x2c   :  { %172 = vmatpush.bf16.msra.mxu0 %v475_v10 }
  0x2d   :  { %257 = vmatpush.bf16.msra.mxu1 %v483_v15 }
  0x2e   :  { %341 = vmatpush.bf16.msra.mxu2 %v492_v30 }
  0x30   :  { %173 = vmatpush.bf16.msra.mxu0 %v474_v11 }
  0x31   :  { %258 = vmatpush.bf16.msra.mxu1 %v482_v16 }
  0x32   :  { %342 = vmatpush.bf16.msra.mxu2 %v491_v31 }
  0x33   :  { %174 = vmatmul.bf16.vlgmr.msra.gmra.mxu0 %v473_v12 }
  0x36   :  { %343 = vmatpush.bf16.msra.mxu2 %v490_v32 }
  0xb0   :  { %v175_v21 = vpop.f32.mrf.mxu0 }
  0xb1   :  { %v176_v23 = vadd.f32 %v507_v22, %v175_v21 }
  0xb3   :  { %v180_v26 = vmax.f32 %v176_v23, 0.0 }
  0xb8   :  { %v177_v24 = vpop.f32.mrf.mxu0 }
  0xb9   :  { %v178_v25 = vadd.f32 %v507_v22, %v177_v24 }
  0xbb   :  { %v181_v27 = vmax.f32 %v178_v25, 0.0 }
  0xbd   :  { %v182_v28 = vpack.c.bf16 %v181_v27, %v180_v26 }
  0xbf   :  { %259 = vmatmul.bf16.vlgmr.msra.gmra.mxu1 %v182_v28 }
 0x13c   :  { %v260_v33 = vpop.f32.mrf.mxu1 }
 0x13d   :  { %v261_v35 = vadd.f32 %v508_v34, %v260_v33 }
 0x13f   :  { %v265_v38 = vmax.f32 %v261_v35, 0.0 }
 0x144   :  { %v262_v36 = vpop.f32.mrf.mxu1 }
 0x145   :  { %v263_v37 = vadd.f32 %v508_v34, %v262_v36 }
 0x147   :  { %v266_v39 = vmax.f32 %v263_v37, 0.0 }
 0x149   :  { %v267_v40 = vpack.c.bf16 %v266_v39, %v265_v38 }
 0x14b   :  { %344 = vmatmul.bf16.vlgmr.msra.gmra.mxu2 %v267_v40 }
 0x1ce   :  { %v345_v42 = vpop.f32.mrf.mxu2 }
 0x1cf   :  { %v346_v43 = vadd.f32 %v509_v41, %v345_v42 }
 0x1d1   :  { %350 = vst [vmem:[#allocation10] sm:$0xff] %v346_v43 }
 0x1d6   :  { %v347_v44 = vpop.f32.mrf.mxu2 }
 0x1d7   :  { %v348_v45 = vadd.f32 %v509_v41, %v347_v44 }
 0x1d9   :  { %351 = vst [vmem:[#allocation10 + $0x8] sm:$0xff] %v348_v45 }
 0x1da   :  { %364 = dma.vmem_to_hbm [thread:$0]  %s357_s25, 256, %s359_s4, [#allocation4], %s645_s28, %s645_s28, %s646_s29  }
 0x1db   :  { %636 = dma.done.wait [#allocation4], 256  }
 0x1dc   :  { %637 = vsyncadd [#allocation4], 4294967040 }
 0x1dd   :  { %369 = vsyncpa [#allocation3], 1 }
 0x1de   :  { %370 = vsyncpa [#allocation6], 1 }
 0x1df   :  { %371 = vsyncpa [#allocation9], 1 }
 0x1e0   :  { %372 = vsyncpa [#allocation4], 1 }

</bundles_post_ra>
